<compile_context>
chip_gen: v7x
topology: tpu7x:2x2x1
jax: 0.10.0
libtpu: 0.0.40
codegen_flags: <defaults>
</compile_context>

<pallas_src>
import jax
import jax.numpy as jnp
from jax.experimental import pallas as pl
from jax.experimental.pallas import tpu as pltpu

BN_EPS = 1e-5


def _round_up(x, m):
    return (x + m - 1) // m * m


def _make_kernel(valid_batch, padded_batch, x_resident, tk):
    """Fused matmul + BN(train) + ReLU kernel. Constants baked at trace time."""

    def kernel(x_ref, w_ref, g_ref, bt_ref, o_ref):
        k = pl.program_id(1)

        @pl.when(k == 0)
        def _():
            o_ref[...] = jnp.zeros_like(o_ref)

        if x_resident:
            # x block is the full (B_pad, K_pad) array, resident in VMEM;
            # slice the current K chunk (aligned, lane-dense).
            start = pl.multiple_of(k * tk, tk)
            x_tile = x_ref[:, pl.ds(start, tk)]
        else:
            x_tile = x_ref[...]

        # Standard [M,K] x [K,N] matmul on the MXU; f32 accumulation into the
        # resident f32 output block (no scratch, no epilogue copy).
        o_ref[...] += jnp.dot(x_tile, w_ref[...],
                              preferred_element_type=jnp.float32)

        @pl.when(k == pl.num_programs(1) - 1)
        def _():
            z = o_ref[...]                                   # (B_pad, TN) f32
            inv_b = 1.0 / valid_batch
            # Padded x rows are zero and bias is dropped, so padded rows of z
            # are exactly zero -> the mean needs no mask.
            mean = jnp.sum(z, axis=0, keepdims=True) * inv_b
            centered = z - mean
            if padded_batch != valid_batch:
                rows = jax.lax.broadcasted_iota(jnp.int32, (padded_batch, 1), 0)
                sq = jnp.where(rows < valid_batch, centered * centered, 0.0)
            else:
                sq = centered * centered
            var = jnp.sum(sq, axis=0, keepdims=True) * inv_b
            inv_std = jax.lax.rsqrt(var + BN_EPS)
            # Fold BN affine: y = z * scale + shift, then ReLU.
            scale = g_ref[...] * inv_std                      # (1, TN)
            shift = bt_ref[...] - mean * scale                # (1, TN)
            o_ref[...] = jnp.maximum(z * scale + shift, 0.0).astype(o_ref.dtype)

    return kernel


def linear_bn_relu(x, weight, bias=None, gamma=None, beta=None, *,
                   tn=256, tk=1024, compute_dtype=None):
    """Fused Linear -> BatchNorm1d(training batch stats) -> ReLU.

    x:      (B, in_features)
    weight: (out_features, in_features)   PyTorch Linear layout
    bias:   (out_features,) or None  -- accepted but unused: a bias added
            before BatchNorm is exactly cancelled by the mean subtraction.
    gamma/beta: BatchNorm1d affine parameters (default ones / zeros).
    compute_dtype: MXU operand dtype. Defaults to bfloat16 when x is f32
            (f32 accumulation and BN math); pass jnp.float32 for exact mode.
    """
    del bias  # cancelled by BatchNorm's mean subtraction; output is identical
    # TODO(synk): BatchNorm running_mean/running_var buffer updates (training
    # side-effect, not part of the forward output) are not implemented.

    B, in_f = x.shape
    out_f, in_f_w = weight.shape
    assert in_f_w == in_f, "weight must be (out_features, in_features)"

    if gamma is None:
        gamma = jnp.ones((out_f,), jnp.float32)
    if beta is None:
        beta = jnp.zeros((out_f,), jnp.float32)

    if compute_dtype is not None:
        mm_dtype = jnp.dtype(compute_dtype)
    elif x.dtype == jnp.float32:
        mm_dtype = jnp.dtype(jnp.bfloat16)   # native MXU rate, half HBM bytes
    else:
        mm_dtype = jnp.dtype(x.dtype)
    itemsize = mm_dtype.itemsize

    # --- tile / padding arithmetic ------------------------------------------
    sublane = max(8, 32 // itemsize)            # 8 (f32), 16 (bf16), 32 (8-bit)
    B_pad = _round_up(B, sublane)

    vmem_cap = 64 * 1024 * 1024                 # conservative fallback (v7x)
    try:
        vmem_cap = int(pltpu.get_tpu_info().vmem_capacity_bytes)
    except Exception:
        pass
    budget = int(vmem_cap * 0.75)

    N_pad128 = _round_up(out_f, 128)
    TN = min(_round_up(tn, 128), N_pad128)
    if N_pad128 // TN < 2 and N_pad128 >= 256:
        TN = _round_up(N_pad128 // 2, 128)      # keep >=2 N tiles (v7x megacore)
    TK = min(_round_up(tk, 128), _round_up(in_f, 128))

    def _need(tk_, tn_, x_res, k_pad_):
        return (2 * B_pad * (k_pad_ if x_res else tk_) * itemsize   # x
                + 2 * tk_ * tn_ * itemsize                          # weight
                + 2 * 2 * tn_ * 4 * 2                               # gamma/beta
                + 2 * B_pad * tn_ * 4)                              # f32 output

    while True:
        K_pad = _round_up(in_f, TK)
        N_pad = _round_up(out_f, TN)
        n_tiles = N_pad // TN
        k_tiles = K_pad // TK
        x_resident = n_tiles > 1 and _need(TK, TN, True, K_pad) <= budget
        vmem_need = _need(TK, TN, x_resident, K_pad)
        if vmem_need <= budget or (TK <= 128 and TN <= 128):
            break
        if TK > 128:
            TK = max(128, _round_up(TK // 2, 128))
        else:
            TN = max(128, _round_up(TN // 2, 128))

    # --- host-side prep (skips copies when already aligned / same dtype) -----
    def _cast_pad(a, dtype, pads):
        if a.dtype != dtype:
            a = a.astype(dtype)
        if any(p != 0 for _, p in pads):
            a = jnp.pad(a, pads)
        return a

    x_p = _cast_pad(x, mm_dtype, ((0, B_pad - B), (0, K_pad - in_f)))
    # Pre-transpose weight to (K, N): standard MXU matmul, no in-kernel XLU
    # transpose. For a reused parameter this is amortized to ~zero.
    w_p = _cast_pad(weight.T, mm_dtype, ((0, K_pad - in_f), (0, N_pad - out_f)))
    g_p = _cast_pad(gamma.reshape(1, out_f), jnp.float32,
                    ((0, 0), (0, N_pad - out_f)))
    bt_p = _cast_pad(beta.reshape(1, out_f), jnp.float32,
                     ((0, 0), (0, N_pad - out_f)))

    vmem_limit = int(min(max(vmem_need + (2 << 20), 4 << 20), vmem_cap))

    x_read_passes = 1 if x_resident else n_tiles
    cost = pl.CostEstimate(
        flops=2 * B_pad * K_pad * N_pad,
        transcendentals=0,
        bytes_accessed=(
            (B_pad * K_pad * x_read_passes + K_pad * N_pad) * itemsize
            + (B_pad * N_pad + 2 * N_pad) * 4
        ),
    )

    if x_resident:
        x_spec = pl.BlockSpec((B_pad, K_pad), lambda j, k: (0, 0))
    else:
        x_spec = pl.BlockSpec((B_pad, TK), lambda j, k: (0, k))

    out = pl.pallas_call(
        _make_kernel(B, B_pad, x_resident, TK),
        out_shape=jax.ShapeDtypeStruct((B_pad, N_pad), jnp.float32),
        grid_spec=pltpu.PrefetchScalarGridSpec(
            num_scalar_prefetch=0,
            grid=(n_tiles, k_tiles),           # N parallel, K innermost reduction
            in_specs=[
                x_spec,                                          # x
                pl.BlockSpec((TK, TN), lambda j, k: (k, j)),     # weight (K, N)
                pl.BlockSpec((1, TN), lambda j, k: (0, j)),      # gamma
                pl.BlockSpec((1, TN), lambda j, k: (0, j)),      # beta
            ],
            out_specs=pl.BlockSpec((B_pad, TN), lambda j, k: (0, j)),
        ),
        compiler_params=pltpu.CompilerParams(
            dimension_semantics=("parallel", "arbitrary"),
            vmem_limit_bytes=vmem_limit,
        ),
        cost_estimate=cost,
    )(x_p, w_p, g_p, bt_p)

    return out[:B, :out_f]


def _init_params(key, in_features, out_features):
    """Deterministic init mimicking PyTorch defaults."""
    kw, kb = jax.random.split(key)
    bound = 1.0 / jnp.sqrt(in_features)
    weight = jax.random.uniform(
        kw, (out_features, in_features), jnp.float32, -bound, bound)
    bias = jax.random.uniform(kb, (out_features,), jnp.float32, -bound, bound)
    gamma = jnp.ones((out_features,), jnp.float32)   # BatchNorm1d weight
    beta = jnp.zeros((out_features,), jnp.float32)   # BatchNorm1d bias
    return weight, bias, gamma, beta


def _reference(x, weight, bias, gamma, beta):
    z = x @ weight.T + bias
    mean = z.mean(axis=0, keepdims=True)
    var = ((z - mean) ** 2).mean(axis=0, keepdims=True)   # biased, BN training
    y = gamma * (z - mean) / jnp.sqrt(var + BN_EPS) + beta
    return jnp.maximum(y, 0.0)


if __name__ == "__main__":
    key = jax.random.PRNGKey(0)

    # --- test 1: small aligned shapes, exact f32 compute path ----------------
    B, in_features, out_features = 8, 32, 64
    kx, kp, key = jax.random.split(key, 3)
    x = jax.random.normal(kx, (B, in_features), jnp.float32)
    weight, bias, gamma, beta = _init_params(kp, in_features, out_features)

    out = linear_bn_relu(x, weight, bias, gamma, beta,
                         compute_dtype=jnp.float32)
    out = jax.block_until_ready(out)
    ref = _reference(x, weight, bias, gamma, beta)
    assert out.shape == (B, out_features)
    assert jnp.allclose(out, ref, atol=5e-4, rtol=5e-4), "mismatch (t1 f32)"

    # --- test 2: ragged shapes, default bf16 operands, resident-x path -------
    B2, in2, out2 = 10, 200, 300
    kx2, kp2, key = jax.random.split(key, 3)
    x2 = jax.random.normal(kx2, (B2, in2), jnp.float32)
    w2, b2, g2, be2 = _init_params(kp2, in2, out2)

    out2_v = linear_bn_relu(x2, w2, b2, g2, be2, tn=128, tk=128)
    out2_v = jax.block_until_ready(out2_v)
    ref2 = _reference(x2, w2, b2, g2, be2)
    assert out2_v.shape == (B2, out2)
    assert jnp.allclose(out2_v, ref2, atol=6e-2, rtol=6e-2), "mismatch (t2 bf16)"

    # --- test 3: out_f=256 exercises the TN split (n_tiles >= 2) -------------
    B3, in3, out3 = 32, 512, 256
    kx3, kp3 = jax.random.split(key)
    x3 = jax.random.normal(kx3, (B3, in3), jnp.float32)
    w3, b3, g3, be3 = _init_params(kp3, in3, out3)

    out3_v = linear_bn_relu(x3, w3, b3, g3, be3)
    out3_v = jax.block_until_ready(out3_v)
    ref3 = _reference(x3, w3, b3, g3, be3)
    assert out3_v.shape == (B3, out3)
    assert jnp.allclose(out3_v, ref3, atol=6e-2, rtol=6e-2), "mismatch (t3 bf16)"

    print("KERNEL_OK")
</pallas_src>

<mosaic_0001>
module attributes {stable_mosaic.version = 11 : i64} {
  func.func @kernel(%arg0: i32, %arg1: i32, %arg2: memref<8x128xf32, #tpu.memory_space<vmem>>, %arg3: memref<128x128xf32, #tpu.memory_space<vmem>>, %arg4: memref<1x128xf32, #tpu.memory_space<vmem>>, %arg5: memref<1x128xf32, #tpu.memory_space<vmem>>, %arg6: memref<8x128xf32, #tpu.memory_space<vmem>>) attributes {dimension_semantics = [#tpu.dimension_semantics<parallel>, #tpu.dimension_semantics<arbitrary>], iteration_bounds = array<i64: 1, 1>, scalar_prefetch = 0 : i64, scratch_operands = 0 : i64, tpu.core_type = #tpu.core_type<tc>, window_params = [{transform_indices = @transform_0, window_bounds = array<i64: 8, 128>}, {transform_indices = @transform_1, window_bounds = array<i64: 128, 128>}, {transform_indices = @transform_2, window_bounds = array<i64: 1, 128>}, {transform_indices = @transform_3, window_bounds = array<i64: 1, 128>}, {transform_indices = @transform_4, window_bounds = array<i64: 8, 128>}]} {
    %c0_i32 = arith.constant 0 : i32
    %0 = arith.cmpi eq, %arg1, %c0_i32 : i32
    %1 = arith.extui %0 : i1 to i32
    %c0_i32_0 = arith.constant 0 : i32
    %2 = arith.cmpi ne, %1, %c0_i32_0 : i32
    scf.if %2 {
      %cst_10 = arith.constant 0.000000e+00 : f32
      %12 = vector.broadcast %cst_10 : f32 to vector<8x128xf32>
      %c0_11 = arith.constant 0 : index
      %c0_12 = arith.constant 0 : index
      %13 = vector.load %arg6[%c0_11, %c0_12] : memref<8x128xf32, #tpu.memory_space<vmem>>, vector<8x128xf32>
      tpu.vector_store %arg6[%c0_11, %c0_12], %12 {strides = array<i32>} : memref<8x128xf32, #tpu.memory_space<vmem>>, vector<8x128xf32>,
    } else {
    }
    %c0 = arith.constant 0 : index
    %c0_1 = arith.constant 0 : index
    %3 = vector.load %arg2[%c0, %c0_1] : memref<8x128xf32, #tpu.memory_space<vmem>>, vector<8x128xf32>
    %c0_2 = arith.constant 0 : index
    %c0_3 = arith.constant 0 : index
    %4 = vector.load %arg6[%c0_2, %c0_3] : memref<8x128xf32, #tpu.memory_space<vmem>>, vector<8x128xf32>
    %c0_4 = arith.constant 0 : index
    %c0_5 = arith.constant 0 : index
    %5 = vector.load %arg3[%c0_4, %c0_5] : memref<128x128xf32, #tpu.memory_space<vmem>>, vector<128x128xf32>
    %cst = arith.constant dense<0.000000e+00> : vector<8x128xf32>
    %6 = tpu.matmul %3, %5, %cst {dimension_numbers = #tpu.dot_dimension_numbers<[1], [0], [0], [1], [0, 0, 1, 1], [], []>} : vector<8x128xf32>, vector<128x128xf32>, vector<8x128xf32> -> vector<8x128xf32>
    %7 = arith.addf %4, %6 : vector<8x128xf32>
    %c0_6 = arith.constant 0 : index
    %c0_7 = arith.constant 0 : index
    %8 = vector.load %arg6[%c0_6, %c0_7] : memref<8x128xf32, #tpu.memory_space<vmem>>, vector<8x128xf32>
    tpu.vector_store %arg6[%c0_6, %c0_7], %7 {strides = array<i32>} : memref<8x128xf32, #tpu.memory_space<vmem>>, vector<8x128xf32>,
    %c0_i32_8 = arith.constant 0 : i32
    %9 = arith.cmpi eq, %arg1, %c0_i32_8 : i32
    %10 = arith.extui %9 : i1 to i32
    %c0_i32_9 = arith.constant 0 : i32
    %11 = arith.cmpi ne, %10, %c0_i32_9 : i32
    scf.if %11 {
      %c0_10 = arith.constant 0 : index
      %c0_11 = arith.constant 0 : index
      %12 = vector.load %arg6[%c0_10, %c0_11] : memref<8x128xf32, #tpu.memory_space<vmem>>, vector<8x128xf32>
      %cst_12 = arith.constant dense<0.000000e+00> : vector<128xf32>
      %13 = vector.multi_reduction <add>, %12, %cst_12 [0] : vector<8x128xf32> to vector<128xf32>
      %14 = vector.shape_cast %13 : vector<128xf32> to vector<1x128xf32>
      %cst_13 = arith.constant 1.250000e-01 : f32
      %15 = vector.broadcast %cst_13 : f32 to vector<1x128xf32>
      %16 = arith.mulf %14, %15 : vector<1x128xf32>
      %17 = vector.broadcast %16 : vector<1x128xf32> to vector<8x128xf32>
      %18 = arith.subf %12, %17 : vector<8x128xf32>
      %19 = arith.mulf %18, %18 : vector<8x128xf32>
      %cst_14 = arith.constant dense<0.000000e+00> : vector<128xf32>
      %20 = vector.multi_reduction <add>, %19, %cst_14 [0] : vector<8x128xf32> to vector<128xf32>
      %21 = vector.shape_cast %20 : vector<128xf32> to vector<1x128xf32>
      %cst_15 = arith.constant 1.250000e-01 : f32
      %22 = vector.broadcast %cst_15 : f32 to vector<1x128xf32>
      %23 = arith.mulf %21, %22 : vector<1x128xf32>
      %cst_16 = arith.constant 9.99999974E-6 : f32
      %24 = vector.broadcast %cst_16 : f32 to vector<1x128xf32>
      %25 = arith.addf %23, %24 : vector<1x128xf32>
      %26 = math.rsqrt %25 : vector<1x128xf32>
      %c0_17 = arith.constant 0 : index
      %c0_18 = arith.constant 0 : index
      %27 = vector.load %arg4[%c0_17, %c0_18] : memref<1x128xf32, #tpu.memory_space<vmem>>, vector<1x128xf32>
      %28 = arith.mulf %27, %26 : vector<1x128xf32>
      %c0_19 = arith.constant 0 : index
      %c0_20 = arith.constant 0 : index
      %29 = vector.load %arg5[%c0_19, %c0_20] : memref<1x128xf32, #tpu.memory_space<vmem>>, vector<1x128xf32>
      %30 = arith.mulf %16, %28 : vector<1x128xf32>
      %31 = arith.subf %29, %30 : vector<1x128xf32>
      %32 = vector.broadcast %28 : vector<1x128xf32> to vector<8x128xf32>
      %33 = arith.mulf %12, %32 : vector<8x128xf32>
      %34 = vector.broadcast %31 : vector<1x128xf32> to vector<8x128xf32>
      %35 = arith.addf %33, %34 : vector<8x128xf32>
      %cst_21 = arith.constant 0.000000e+00 : f32
      %36 = vector.broadcast %cst_21 : f32 to vector<8x128xf32>
      %37 = arith.maximumf %35, %36 : vector<8x128xf32>
      %c0_22 = arith.constant 0 : index
      %c0_23 = arith.constant 0 : index
      %38 = vector.load %arg6[%c0_22, %c0_23] : memref<8x128xf32, #tpu.memory_space<vmem>>, vector<8x128xf32>
      tpu.vector_store %arg6[%c0_22, %c0_23], %37 {strides = array<i32>} : memref<8x128xf32, #tpu.memory_space<vmem>>, vector<8x128xf32>,
    } else {
    }
    return
  }
  func.func @transform_0(%arg0: i32, %arg1: i32) -> (i32, i32) {
    %c0_i32 = arith.constant 0 : i32
    %c0_i32_0 = arith.constant 0 : i32
    return %c0_i32, %arg1 : i32, i32
  }
  func.func @transform_1(%arg0: i32, %arg1: i32) -> (i32, i32) {
    %c0_i32 = arith.constant 0 : i32
    return %arg1, %arg0 : i32, i32
  }
  func.func @transform_2(%arg0: i32, %arg1: i32) -> (i32, i32) {
    %c0_i32 = arith.constant 0 : i32
    %c0_i32_0 = arith.constant 0 : i32
    return %c0_i32, %arg0 : i32, i32
  }
  func.func @transform_3(%arg0: i32, %arg1: i32) -> (i32, i32) {
    %c0_i32 = arith.constant 0 : i32
    %c0_i32_0 = arith.constant 0 : i32
    return %c0_i32, %arg0 : i32, i32
  }
  func.func @transform_4(%arg0: i32, %arg1: i32) -> (i32, i32) {
    %c0_i32 = arith.constant 0 : i32
    %c0_i32_0 = arith.constant 0 : i32
    return %c0_i32, %arg0 : i32, i32
  }
}

</mosaic_0001>

<bundles_post_ra>
// kernel: tpu_custom_call.1
= control target key start
LH: loop header
LB: loop body
LE: loop exit
PB: predicated region body
PF: predicated region fallthrough
CT: control target
= control target key end

     0   :  { %9 = vsyncpa [#allocation3], 0  ;;  %s438_s0 = inlined_call_operand.hbm [shape: f32[8,128], index: 0, kind: input, shape index: {}]   ;;  %s439_s1 = inlined_call_operand.hbm [shape: f32[128,128], index: 1, kind: input, shape index: {}]   ;;  %s440_s2 = inlined_call_operand.vmem [shape: f32[1,128], index: 2, kind: input, shape index: {}]   ;;  %s441_s3 = inlined_call_operand.vmem [shape: f32[1,128], index: 3, kind: input, shape index: {}]   ;;  %s442_s4 = inlined_call_operand.hbm [shape: f32[8,128], index: 4, kind: output, shape index: {}]  }
   0x1   :  { %10 = vsyncpa [#allocation6], 0 }
   0x2   :  { %11 = vsyncpa [#allocation4], 0  ;;  %s356_s15 = smov [#allocation2]   ;;  %s357_s17 = smov [#allocation5]  }
   0x3   :  { %s18_s16 = sshll.u32 %s356_s15, 4  ;;  %s27_s18 = sshll.u32 %s357_s17, 4  ;;  %s19_s16 = int_to_ptr.vmem [resolvable:$true] %s18_s16  ;;  %s389_s18 = int_to_ptr.vmem [resolvable:$true] %s27_s18 }
   0x4   :  { %s284_s21 = scalar_lea.hbm %s438_s0, 128 }
   0x5   :  { %p285_p0 = scmp.ne.s32.totalorder %s438_s0, %s284_s21  ;;  %p288_p1 = scmp.lt.u32.totalorder %s284_s21, %s438_s0 }
   0x7   :  { %p290_p2 = pnand %p288_p1, %p285_p0 }
   0x9   :  { %293 = shalt.err (!%p290_p2)
}
   0xa   :  { %s294_s26 = scalar_lea.vmem %s19_s16, 128  ;;  %p299_p4 = scmp.lt.s32.totalorder %s19_s16, %s19_s16 }
   0xb   :  { %p295_p3 = scmp.ne.s32.totalorder %s19_s16, %s294_s26  ;;  %p300_p5 = scmp.lt.s32.totalorder %s294_s26, %s294_s26 }
   0xd   :  { %p301_p6 = por %p300_p5, %p299_p4 }
   0xf   :  { %p302_p7 = pnand %p301_p6, %p295_p3 }
  0x11   :  { %305 = shalt.err (!%p302_p7)
}
  0x12   :  { %21 = dma.hbm_to_vmem [thread:$0]  %s438_s0, 128, %s19_s16, [#allocation3]  }
  0x13   :  { %s306_s5 = scalar_lea.hbm %s439_s1, 2048 }
  0x14   :  { %p307_p8 = scmp.ne.s32.totalorder %s439_s1, %s306_s5  ;;  %p310_p9 = scmp.lt.u32.totalorder %s306_s5, %s439_s1 }
  0x16   :  { %p312_p10 = pnand %p310_p9, %p307_p8 }
  0x18   :  { %315 = shalt.err (!%p312_p10)
}
  0x19   :  { %s316_s10 = scalar_lea.vmem %s389_s18, 2048  ;;  %p321_p12 = scmp.lt.s32.totalorder %s389_s18, %s389_s18 }
  0x1a   :  { %p317_p11 = scmp.ne.s32.totalorder %s389_s18, %s316_s10  ;;  %p322_p13 = scmp.lt.s32.totalorder %s316_s10, %s316_s10 }
  0x1c   :  { %p323_p0 = por %p322_p13, %p321_p12 }
  0x1e   :  { %p324_p1 = pnand %p323_p0, %p317_p11 }
  0x20   :  { %327 = shalt.err (!%p324_p1)
}
  0x21   :  { %s358_s0 = smov 128   ;;  %s359_s11 = smov 8  }
  0x22   :  { %33 = dma.hbm_to_vmem [thread:$0]  %s439_s1, 2048, %s389_s18, [#allocation6], %s358_s0, %s358_s0, %s359_s11  }
  0x23   :  { %350 = dma.done.wait [#allocation3], 128  }
  0x24   :  { %351 = vsyncadd [#allocation3], 4294967168 }
  0x25   :  { %352 = dma.done.wait [#allocation6], 2048  }
  0x26   :  { %353 = vsyncadd [#allocation6], 4294965248  ;;  %v360_v0 = vmov 0.0|0.0   ;;  %vm361_vm0 = vmmov 0   ;;  %v362_v1 = vmov 0.0   ;;  %v51_v2 = vld [vmem:[#allocation5] sm:$0xff]  ;;  %v167_v46 = vlaneseq }
  0x27   :  { %250 = vmatprep.subr.bf16.mxu0 %v360_v0  ;;  %247 = vmatprep.mubr.msk.f32.mxu0 %vm361_vm0, %v362_v1  ;;  %v52_v3 = vld [vmem:[#allocation5 + $0x8] sm:$0xff]  ;;  %v53_v4 = vld [vmem:[#allocation5 + $0x10] sm:$0xff]  ;;  %v54_v6 = vld [vmem:[#allocation5 + $0x18] sm:$0xff]  ;;  %s363_s17 = smov [#allocation7]  }
  0x28   :  { %v251_v5 = vpack.c.bf16 %v52_v3, %v51_v2  ;;  %v254_v7 = vpack.c.bf16 %v54_v6, %v53_v4  ;;  %v55_v8 = vld [vmem:[#allocation5 + $0x20] sm:$0xff]  ;;  %v56_v9 = vld [vmem:[#allocation5 + $0x28] sm:$0xff]  ;;  %v57_v11 = vld [vmem:[#allocation5 + $0x30] sm:$0xff]  ;;  %v168_v47 = vshrl.u32 %v167_v46, 7  ;;  %s188_s18 = sshll.u32 %s363_s17, 4  ;;  %s189_s18 = int_to_ptr.vmem [resolvable:$true] %s188_s18 }
  0x29   :  { %v257_v10 = vpack.c.bf16 %v56_v9, %v55_v8  ;;  %v58_v12 = vld [vmem:[#allocation5 + $0x38] sm:$0xff]  ;;  %v59_v14 = vld [vmem:[#allocation5 + $0x40] sm:$0xff]  ;;  %v60_v15 = vld [vmem:[#allocation5 + $0x48] sm:$0xff]  ;;  %s328_s19 = scalar_lea.vmem %s189_s18, 128  ;;  %p333_p3 = scmp.lt.s32.totalorder %s189_s18, %s189_s18 }
  0x2a   :  { %252 = vmatpush3.bf16.msra.mxu0 %v251_v5  ;;  %v260_v13 = vpack.c.bf16 %v58_v12, %v57_v11  ;;  %v263_v16 = vpack.c.bf16 %v60_v15, %v59_v14  ;;  %v61_v17 = vld [vmem:[#allocation5 + $0x50] sm:$0xff]  ;;  %v62_v18 = vld [vmem:[#allocation5 + $0x58] sm:$0xff]  ;;  %v63_v20 = vld [vmem:[#allocation5 + $0x60] sm:$0xff]  ;;  %v169_v49 = vsub.s32 0, %v168_v47  ;;  %p329_p2 = scmp.ne.s32.totalorder %s189_s18, %s328_s19  ;;  %p334_p4 = scmp.lt.s32.totalorder %s328_s19, %s328_s19 }
  0x2b   :  { %253 = vmatprep.subr.bf16.mxu0 %v360_v0  ;;  %v266_v19 = vpack.c.bf16 %v62_v18, %v61_v17  ;;  %v64_v21 = vld [vmem:[#allocation5 + $0x68] sm:$0xff]  ;;  %v65_v23 = vld [vmem:[#allocation5 + $0x70] sm:$0xff]  ;;  %v66_v24 = vld [vmem:[#allocation5 + $0x78] sm:$0xff] }
  0x2c   :  { %v269_v22 = vpack.c.bf16 %v64_v21, %v63_v20  ;;  %v272_v25 = vpack.c.bf16 %v66_v24, %v65_v23  ;;  %v49_v26 = vld [vmem:[#allocation2] sm:$0xff]  ;;  %p335_p5 = por %p334_p4, %p333_p3 }
  0x2d   :  { %v161_v48 = vld [vmem:[%s440_s2] sm:$0x1] }
  0x2e   :  { %255 = vmatpush3.bf16.msra.mxu0 %v254_v7  ;;  %v163_v52 = vld [vmem:[%s441_s3] sm:$0x1]  ;;  %p336_p6 = pnand %p335_p5, %p329_p2 }
  0x2f   :  { %256 = vmatprep.subr.bf16.mxu0 %v360_v0 }
  0x32   :  { %258 = vmatpush3.bf16.msra.mxu0 %v257_v10 }
  0x33   :  { %259 = vmatprep.subr.bf16.mxu0 %v360_v0 }
  0x36   :  { %261 = vmatpush3.bf16.msra.mxu0 %v260_v13 }
  0x37   :  { %262 = vmatprep.subr.bf16.mxu0 %v360_v0 }
  0x3a   :  { %264 = vmatpush3.bf16.msra.mxu0 %v263_v16 }
  0x3b   :  { %265 = vmatprep.subr.bf16.mxu0 %v360_v0 }
  0x3e   :  { %267 = vmatpush3.bf16.msra.mxu0 %v266_v19 }
  0x3f   :  { %268 = vmatprep.subr.bf16.mxu0 %v360_v0 }
  0x42   :  { %270 = vmatpush3.bf16.msra.mxu0 %v269_v22 }
  0x43   :  { %271 = vmatprep.subr.bf16.mxu0 %v360_v0 }
  0x46   :  { %273 = vmatpush3.bf16.msra.mxu0 %v272_v25 }
  0x49   :  { %248 = vmatmul.mubr.f32.vlgmr.msra.gmra.mrb[0].mxu0 %v49_v26 }
 0x11c   :  { %v133_v27 = vpop.f32.mrb[0].mxu0 }
 0x11d   :  { %v249_v28 = vpop.f32.mrb[1].mxu0  ;;  %v143_v29 = vrot.slane %v133_v27, 4 }
 0x11f   :  { %v144_v30 = vadd.f32 %v143_v29, %v133_v27 }
 0x121   :  { %v145_v31 = vrot.slane %v144_v30, 2 }
 0x123   :  { %v146_v32 = vadd.f32 %v145_v31, %v144_v30 }
 0x125   :  { %v147_v33 = vrot.slane %v146_v32, 1 }
 0x127   :  { %v148_v34 = vadd.f32 %v147_v33, %v146_v32 }
 0x129   :  { %v149_v35 = vmul.f32 0.125, %v148_v34 }
 0x12b   :  { %v150_v36 = vsub.f32 %v133_v27, %v149_v35 }
 0x12d   :  { %v151_v37 = vmul.f32 %v150_v36, %v150_v36 }
 0x12f   :  { %v152_v38 = vrot.slane %v151_v37, 4 }
 0x131   :  { %v153_v39 = vadd.f32 %v152_v38, %v151_v37 }
 0x133   :  { %v154_v40 = vrot.slane %v153_v39, 2 }
 0x135   :  { %v155_v41 = vadd.f32 %v154_v40, %v153_v39 }
 0x137   :  { %v156_v42 = vrot.slane %v155_v41, 1 }
 0x139   :  { %v157_v43 = vadd.f32 %v156_v42, %v155_v41 }
 0x13b   :  { %v158_v44 = vmul.f32 0.125, %v157_v43 }
 0x13d   :  { %v159_v45 = vadd.f32 1e-05, %v158_v44 }
 0x13f   :  { %282 = vrsqrt.f32 %v159_v45 }
 0x149   :  { %v283_v50 = vpop.eup %282 }
 0x14a   :  { %v162_v51 = vmul.f32 %v283_v50, %v161_v48 }
 0x14c   :  { %v164_v53 = vmul.f32 %v162_v51, %v149_v35  ;;  %v170_v54 = vrot.slane %v162_v51, %v169_v49 }
 0x14e   :  { %v165_v55 = vsub.f32 %v163_v52, %v164_v53  ;;  %v172_v56 = vmul.f32 %v170_v54, %v133_v27 }
 0x150   :  { %v177_v57 = vrot.slane %v165_v55, %v169_v49 }
 0x152   :  { %v179_v58 = vadd.f32 %v177_v57, %v172_v56 }
 0x154   :  { %v180_v59 = vmax.f32 %v179_v58, 0.0 }
 0x156   :  { %181 = vst [vmem:[#allocation7] sm:$0xff] %v180_v59 }
 0x157   :  { %339 = shalt.err (!%p336_p6)
}
 0x158   :  { %s340_s20 = scalar_lea.hbm %s442_s4, 128 }
 0x159   :  { %p341_p7 = scmp.ne.s32.totalorder %s442_s4, %s340_s20  ;;  %p344_p8 = scmp.lt.u32.totalorder %s340_s20, %s442_s4 }
 0x15b   :  { %p346_p9 = pnand %p344_p8, %p341_p7 }
 0x15d   :  { %349 = shalt.err (!%p346_p9)
}
 0x15e   :  { %191 = dma.vmem_to_hbm [thread:$0]  %s189_s18, 128, %s442_s4, [#allocation4]  }
 0x15f   :  { %354 = dma.done.wait [#allocation4], 128  }
 0x160   :  { %355 = vsyncadd [#allocation4], 4294967168 }
 0x161   :  { %195 = vsyncpa [#allocation3], 1 }
 0x162   :  { %196 = vsyncpa [#allocation6], 1 }
 0x163   :  { %197 = vsyncpa [#allocation4], 1 }

</bundles_post_ra>
